<compile_context>
chip_gen: v5e
topology: v5e:2x2
jax: 0.10.0
libtpu: 0.0.40
codegen_flags: <defaults>
</compile_context>

<pallas_src>
import math

import jax
import jax.numpy as jnp
from jax.experimental import pallas as pl
from jax.experimental.pallas import tpu as pltpu


def _layer_scale_kernel(x_ref, gamma_ref, o_ref):
    # x_ref:     (tile_rows, L) VMEM tile
    # gamma_ref: (1, L) VMEM tile; constant block index -> stays resident, no re-DMA
    # o_ref:     (tile_rows, L) VMEM tile (lane-dense -> unmasked full-width stores)
    o_ref[...] = (x_ref[...] * gamma_ref[...]).astype(o_ref.dtype)


def _round_up(n: int, m: int) -> int:
    return ((n + m - 1) // m) * m


def _choose_lane_width(n: int, dim: int, max_lanes: int = 4096, target_lanes: int = 512) -> int:
    """Pick lane width L such that L % dim == 0 and L divides n (no padding needed).

    Prefers L that is also a multiple of 128 (full vreg lanes / unmasked stores),
    grown toward target_lanes while it still divides n.
    """
    base = dim * 128 // math.gcd(dim, 128)  # lcm(dim, 128)
    if base <= max_lanes and n % base == 0:
        L = base
        while L < target_lanes and L * 2 <= max_lanes and n % (L * 2) == 0:
            L *= 2
        return L
    # Ragged case: channels-last view (always exact since the trailing dim is `dim`).
    # Copy-free; accepts partially filled lanes when dim is small / not 128-aligned.
    return dim


def _layer_scale_pallas(x: jax.Array, gamma: jax.Array, target_tile_bytes: int) -> jax.Array:
    orig_shape = x.shape
    dim = orig_shape[-1]
    n = x.size
    itemsize = jnp.dtype(x.dtype).itemsize

    L = _choose_lane_width(n, dim)
    rows = n // L                      # exact by construction of L
    x2 = x.reshape(rows, L)            # contiguous reshape: free, no HBM copy

    # Tile gamma across the lane width; keep its own dtype for precision (VPU promotes).
    gamma_wide = jnp.tile(gamma, L // dim).reshape(1, L)

    # Row tiling: ~target_tile_bytes per block, multiple of 32 sublanes.
    SUB = 32
    row_bytes = L * itemsize
    tr = max(1, target_tile_bytes // row_bytes)
    tr = max(SUB, (tr // SUB) * SUB)
    if tr >= rows:
        if rows > 2 * SUB:
            # Keep >= 2 grid steps so v7x's two TensorCores can both get work.
            tr = _round_up(pl.cdiv(rows, 2), SUB)
        else:
            tr = rows                  # single full-extent block (always legal)
    num_tiles = pl.cdiv(rows, tr)      # ragged tail handled by Pallas boundary clipping

    out2 = pl.pallas_call(
        _layer_scale_kernel,
        out_shape=jax.ShapeDtypeStruct((rows, L), x.dtype),
        grid_spec=pltpu.PrefetchScalarGridSpec(
            num_scalar_prefetch=0,
            grid=(num_tiles,),
            in_specs=[
                pl.BlockSpec((tr, L), lambda i: (i, 0)),
                pl.BlockSpec((1, L), lambda i: (0, 0)),   # constant block -> resident
            ],
            out_specs=pl.BlockSpec((tr, L), lambda i: (i, 0)),
        ),
        compiler_params=pltpu.CompilerParams(
            dimension_semantics=("parallel",),
        ),
    )(x2, gamma_wide)

    return out2.reshape(orig_shape)


def layer_scale(
    x: jax.Array,
    gamma: jax.Array,
    *,
    target_tile_bytes: int = 2 << 20,   # ~2 MiB/tile; 2x(in+out) ~8 MiB pipelined VMEM
    min_pallas_bytes: int = 1 << 20,    # below ~1 MiB let XLA fuse the multiply
    force_pallas: bool = False,
) -> jax.Array:
    """LayerScale forward: x * gamma, gamma broadcast over the last (channel) dim."""
    dim = x.shape[-1]
    assert gamma.shape == (dim,)
    total_bytes = x.size * jnp.dtype(x.dtype).itemsize
    if not force_pallas and total_bytes < min_pallas_bytes:
        # Tiny activations: pallas_call launch/pipeline overhead dwarfs the data movement.
        return (x * gamma).astype(x.dtype)
    return _layer_scale_pallas(x, gamma, target_tile_bytes)


if __name__ == "__main__":
    # Module config (deterministic, synthetic): LayerScale(dim=32, init=1e-5)
    batch, seq, dim = 2, 8, 32
    init = 1e-5

    key = jax.random.PRNGKey(0)
    x = jax.random.normal(key, (batch, seq, dim), dtype=jnp.float32)
    gamma = jnp.full((dim,), init, dtype=jnp.float32)  # nn.Parameter(torch.full((dim,), init))

    # force_pallas=True so the Pallas kernel itself is exercised at this small test size.
    out = layer_scale(x, gamma, force_pallas=True)
    jax.block_until_ready(out)

    ref = x * gamma
    assert out.shape == x.shape and out.dtype == x.dtype
    assert jnp.allclose(out, ref, atol=1e-7, rtol=1e-6)

    # Second check: non-divisible row count exercises the ragged (clipped) tail block
    # and a multi-tile grid without any host-side padding.
    x2 = jax.random.normal(jax.random.PRNGKey(1), (4, 197, dim), dtype=jnp.float32)
    out2 = layer_scale(x2, gamma, force_pallas=True)
    jax.block_until_ready(out2)
    assert jnp.allclose(out2, x2 * gamma, atol=1e-7, rtol=1e-6)

    # Third check: channel count not compatible with a lane-dense flatten (falls back to
    # the copy-free channels-last view) still matches the reference.
    dim3 = 48
    x3 = jax.random.normal(jax.random.PRNGKey(2), (3, 7, dim3), dtype=jnp.float32)
    gamma3 = jnp.full((dim3,), 0.5, dtype=jnp.float32)
    out3 = layer_scale(x3, gamma3, force_pallas=True)
    jax.block_until_ready(out3)
    assert jnp.allclose(out3, x3 * gamma3, atol=1e-7, rtol=1e-6)

    print("KERNEL_OK")
</pallas_src>

<mosaic_0001>
module attributes {stable_mosaic.version = 11 : i64} {
  func.func @_layer_scale_kernel(%arg0: i32, %arg1: memref<1x512xf32, #tpu.memory_space<vmem>>, %arg2: memref<1x512xf32, #tpu.memory_space<vmem>>, %arg3: memref<1x512xf32, #tpu.memory_space<vmem>>) attributes {dimension_semantics = [#tpu.dimension_semantics<parallel>], iteration_bounds = array<i64: 1>, scalar_prefetch = 0 : i64, scratch_operands = 0 : i64, tpu.core_type = #tpu.core_type<tc>, window_params = [{transform_indices = @transform_0, window_bounds = array<i64: 1, 512>}, {pipeline_mode = #tpu.pipeline_mode<synchronous>, transform_indices = @transform_1, window_bounds = array<i64: 1, 512>}, {transform_indices = @transform_2, window_bounds = array<i64: 1, 512>}]} {
    %c0 = arith.constant 0 : index
    %c0_0 = arith.constant 0 : index
    %0 = vector.load %arg1[%c0, %c0_0] : memref<1x512xf32, #tpu.memory_space<vmem>>, vector<1x512xf32>
    %c0_1 = arith.constant 0 : index
    %c0_2 = arith.constant 0 : index
    %1 = vector.load %arg2[%c0_1, %c0_2] : memref<1x512xf32, #tpu.memory_space<vmem>>, vector<1x512xf32>
    %2 = arith.mulf %0, %1 : vector<1x512xf32>
    %c0_3 = arith.constant 0 : index
    %c0_4 = arith.constant 0 : index
    %3 = vector.load %arg3[%c0_3, %c0_4] : memref<1x512xf32, #tpu.memory_space<vmem>>, vector<1x512xf32>
    tpu.vector_store %arg3[%c0_3, %c0_4], %2 {strides = array<i32>} : memref<1x512xf32, #tpu.memory_space<vmem>>, vector<1x512xf32>,
    return
  }
  func.func @transform_0(%arg0: i32) -> (i32, i32) {
    %c0_i32 = arith.constant 0 : i32
    %c0_i32_0 = arith.constant 0 : i32
    return %arg0, %c0_i32 : i32, i32
  }
  func.func @transform_1(%arg0: i32) -> (i32, i32) {
    %c0_i32 = arith.constant 0 : i32
    %c0_i32_0 = arith.constant 0 : i32
    %c0_i32_1 = arith.constant 0 : i32
    return %c0_i32, %c0_i32_0 : i32, i32
  }
  func.func @transform_2(%arg0: i32) -> (i32, i32) {
    %c0_i32 = arith.constant 0 : i32
    %c0_i32_0 = arith.constant 0 : i32
    return %arg0, %c0_i32 : i32, i32
  }
}

</mosaic_0001>

<bundles_post_ra>
// kernel: tpu_custom_call.1
= control target key start
LH: loop header
LB: loop body
LE: loop exit
PB: predicated region body
PF: predicated region fallthrough
CT: control target
= control target key end

     0   :  { %7 = vsyncpa [#allocation3], 0  ;;  %s174_s0 = inlined_call_operand.hbm [shape: f32[1,512], index: 0, kind: input, shape index: {}]   ;;  %s175_s1 = inlined_call_operand.hbm [shape: f32[1,512], index: 1, kind: input, shape index: {}]   ;;  %s176_s2 = inlined_call_operand.hbm [shape: f32[1,512], index: 2, kind: output, shape index: {}]  }
   0x1   :  { %8 = vsyncpa [#allocation6], 0 }
   0x2   :  { %9 = vsyncpa [#allocation4], 0  ;;  %s15_s11 = sshll.u32 %s174_s0, 4  ;;  %s147_s12 = smov [#allocation2]   ;;  %s16_s11 = int_to_ptr.hbm [resolvable:$true] %s15_s11 }
   0x3   :  { %s17_s13 = sshll.u32 %s147_s12, 4  ;;  %s26_s16 = sshll.u32 %s175_s1, 4  ;;  %s18_s13 = int_to_ptr.vmem [resolvable:$true] %s17_s13  ;;  %s27_s16 = int_to_ptr.hbm [resolvable:$true] %s26_s16 }
   0x4   :  { %20 = dma.hbm_to_vmem [thread:$0]  %s16_s11, 64, %s18_s13, [#allocation3]  }
   0x5   :  { %s148_s17 = smov [#allocation5]  }
   0x6   :  { %s28_s18 = sshll.u32 %s148_s17, 4  ;;  %s29_s18 = int_to_ptr.vmem [resolvable:$true] %s28_s18 }
   0x7   :  { %31 = dma.hbm_to_vmem [thread:$0]  %s27_s16, 64, %s29_s18, [#allocation6]  }
   0x8   :  { %141 = dma.done.wait [#allocation3], 64  }
   0x9   :  { %142 = vsyncadd [#allocation3], 4294967232 }
   0xa   :  { %143 = dma.done.wait [#allocation6], 64  }
   0xb   :  { %144 = vsyncadd [#allocation6], 4294967232  ;;  %v43_v0 = vlaneseq  ;;  %s149_s0 = smov [#allocation7]   ;;  %s55_s22 = sshll.u32 %s176_s2, 4  ;;  %v40_v1 = vld [vmem:[#allocation2] sm:$0xf]  ;;  %s56_s22 = int_to_ptr.hbm [resolvable:$true] %s55_s22 }
   0xc   :  { %s53_s19 = sshll.u32 %s149_s0, 4  ;;  %v41_v2 = vld [vmem:[#allocation5] sm:$0xf]  ;;  %s54_s19 = int_to_ptr.vmem [resolvable:$true] %s53_s19 }
   0xd   :  { %vm45_vm0 = vcmp.lt.s32.totalorder %v43_v0, 512  ;;  %v42_v3 = vmul.f32 %v41_v2, %v40_v1 }
   0xf   :  { %47 = vst.msk [vmem:[#allocation7] sm:$0xf] %vm45_vm0, %v42_v3 }
  0x10   :  { %58 = dma.vmem_to_hbm [thread:$0]  %s54_s19, 64, %s56_s22, [#allocation4]  }
  0x11   :  { %145 = dma.done.wait [#allocation4], 64  }
  0x12   :  { %146 = vsyncadd [#allocation4], 4294967232 }
  0x13   :  { %63 = vsyncpa [#allocation3], 1 }
  0x14   :  { %64 = vsyncpa [#allocation6], 1 }
  0x15   :  { %65 = vsyncpa [#allocation4], 1 }

</bundles_post_ra>
